<compile_context>
chip_gen: v5e
topology: v5e:2x2
jax: 0.10.0
libtpu: 0.0.40
codegen_flags: <defaults>
</compile_context>

<pallas_src>
import numpy as np
import jax
import jax.numpy as jnp
from jax.experimental import pallas as pl
from jax.experimental.pallas import tpu as pltpu  # noqa: F401  (TPU backend assumed)


# ------------------------------------------------------------------ fused Pallas kernel
def _encoder_kernel(xs_ref, s_ref, w1_ref, b1_ref, w2_ref, b2_ref, msk_ref,
                    w3_ref, b3_ref, w4_ref, b4_ref, o_ref):
    """Whole encoder forward for the batch, fully resident in VMEM.

    xs_ref : (4N, 384)  per-(sample, oh2) input row window (rows 4*oh2 .. 4*oh2+12)
    s_ref  : (N, 4N)    row-group summation matrix (folds 4 oh2 rows per sample)
    w1_ref : (384, 512) conv1 banded matrix, columns = (kh, ow, c) conv2-ready layout
    w2_ref : (512, 256) conv2 banded matrix, columns = torch NCHW flatten index
    msk_ref: (4N, 256)  0/1 ownership mask per (sample, oh2) row
    w3_ref : (256, 128) fc1 (out padded 96->128); w4_ref: (128, 128) fc2 (out 32->128)
    o_ref  : (N, 128)   lane-dense output; caller slices [:, :32]
    """
    f32 = jnp.float32
    relu = lambda t: jnp.maximum(t, 0.0)

    # conv1 + bias + ReLU: one dot for the whole batch (all 25 taps fused along K).
    h1 = relu(jnp.dot(xs_ref[...], w1_ref[...], preferred_element_type=f32)
              + b1_ref[...])                                            # (4N, 512)

    # conv2 (flatten folded into columns) + per-row-group bias/mask + ReLU.
    c2 = jnp.dot(h1, w2_ref[...], preferred_element_type=f32)           # (4N, 256)
    h2 = relu((c2 + b2_ref[...]) * msk_ref[...])                        # (4N, 256)

    # Fold the 4 oh2 row-groups of each sample -> flat (N, 256) = torch .view(-1, 256).
    flat = jnp.dot(s_ref[...], h2, preferred_element_type=f32)          # (N, 256)

    # fc1 + ReLU, fc2 + ReLU; padded to 128 lanes so the single HBM store is lane-dense.
    z1 = relu(jnp.dot(flat, w3_ref[...], preferred_element_type=f32) + b3_ref[...])
    o_ref[...] = relu(jnp.dot(z1, w4_ref[...], preferred_element_type=f32) + b4_ref[...])


# ------------------------------------------------------------------ one-time weight packing
def prepare_params(params):
    """Pack PyTorch-layout weights into the constant slabs the fused kernel consumes.

    Runs once, offline; nothing below executes in the forward hot path.
    """
    w1 = np.asarray(params["conv1_w"], np.float32)   # (8, 1, 5, 5)  torch OIHW
    b1 = np.asarray(params["conv1_b"], np.float32)   # (8,)
    w2 = np.asarray(params["conv2_w"], np.float32)   # (16, 8, 5, 5)
    b2 = np.asarray(params["conv2_b"], np.float32)   # (16,)
    w3 = np.asarray(params["fc1_w"], np.float32)     # (96, 256)
    b3 = np.asarray(params["fc1_b"], np.float32)     # (96,)
    w4 = np.asarray(params["fc2_w"], np.float32)     # (32, 96)
    b4 = np.asarray(params["fc2_b"], np.float32)     # (32,)

    # conv1 banded matrix (384, 512):
    #   LHS row (n, oh2) holds input rows 4*oh2 .. 4*oh2+12 flattened (13*28=364, padded 384).
    #   Output column c = kh*96 + ow*8 + cc holds conv1 output at (row 2*oh2+kh, col ow, ch cc):
    #   w1p[(2*kh+k1)*28 + (2*ow+k2), kh*96 + ow*8 + cc] = w1[cc, 0, k1, k2].
    w1p = np.zeros((384, 512), np.float32)
    b1p = np.zeros((1, 512), np.float32)
    for kh in range(5):
        for k1 in range(5):
            ih = 2 * kh + k1                       # 0..12  (local input row)
            for ow in range(12):
                col0 = kh * 96 + ow * 8
                for k2 in range(5):
                    iw = 2 * ow + k2               # 0..26
                    w1p[ih * 28 + iw, col0:col0 + 8] = w1[:, 0, k1, k2]
    for kh in range(5):
        for ow in range(12):
            b1p[0, kh * 96 + ow * 8: kh * 96 + ow * 8 + 8] = b1

    # conv2 banded matrix (512, 256): output column = torch NCHW flatten index
    # f = co*16 + oh2'*4 + ow2 (oh2' resolved later by the ownership mask):
    #   w2p[kh*96 + (2*ow2+kw)*8 + ci, co*16 + oh2'*4 + ow2] = w2[co, ci, kh, kw].
    w2p = np.zeros((512, 256), np.float32)
    for kh in range(5):
        for kw in range(5):
            for ow2 in range(4):
                row0 = kh * 96 + (2 * ow2 + kw) * 8
                for oh2p in range(4):
                    for co in range(16):
                        col = co * 16 + oh2p * 4 + ow2
                        w2p[row0:row0 + 8, col] = w2[co, :, kh, kw]

    # conv2 bias row and per-oh2 ownership mask (row (n, oh2) owns columns with oh2'==oh2).
    b2row = np.zeros((1, 256), np.float32)
    mask4 = np.zeros((4, 256), np.float32)
    for co in range(16):
        for oh2 in range(4):
            for ow2 in range(4):
                col = co * 16 + oh2 * 4 + ow2
                b2row[0, col] = b2[co]
                mask4[oh2, col] = 1.0

    # fc1 / fc2: pre-transpose and pad outputs to 128 lanes (zeros are ReLU-neutral).
    w3p = np.zeros((256, 128), np.float32); w3p[:, :96] = w3.T
    b3p = np.zeros((1, 128), np.float32);   b3p[0, :96] = b3
    w4p = np.zeros((128, 128), np.float32); w4p[:96, :32] = w4.T
    b4p = np.zeros((1, 128), np.float32);   b4p[0, :32] = b4

    packed = dict(w1p=w1p, b1p=b1p, w2p=w2p, b2row=b2row, mask4=mask4,
                  w3p=w3p, b3p=b3p, w4p=w4p, b4p=b4p)
    return {k: jnp.asarray(v) for k, v in packed.items()}


# ------------------------------------------------------------------ forward wrapper
def _full_spec(shape):
    def index_map():
        return (0,) * len(shape)
    return pl.BlockSpec(shape, index_map)


def encoder_forward(x, packed):
    """x: (N, 1, 28, 28) NCHW float -> (N, 32); matches Encoder.forward."""
    n = x.shape[0]
    xs = x.astype(jnp.float32).reshape(n, 28, 28)

    # Tiny input prep (fused under the same jit as the pallas_call):
    # row window per (sample, oh2): input rows 4*oh2 .. 4*oh2+12 flattened, padded to 384 lanes.
    rows = 4 * jnp.arange(4)[:, None] + jnp.arange(13)[None, :]       # (4, 13)
    slab = xs[:, rows, :].reshape(n * 4, 13 * 28)                     # (4N, 364)
    slab = jnp.pad(slab, ((0, 0), (0, 384 - 364)))                    # (4N, 384) lane-dense

    ssum = jnp.kron(jnp.eye(n, dtype=jnp.float32),
                    jnp.ones((1, 4), jnp.float32))                    # (N, 4N)
    mask = jnp.tile(packed["mask4"], (n, 1))                          # (4N, 256)

    operands = (slab, ssum, packed["w1p"], packed["b1p"], packed["w2p"],
                packed["b2row"], mask, packed["w3p"], packed["b3p"],
                packed["w4p"], packed["b4p"])

    out = pl.pallas_call(
        _encoder_kernel,
        out_shape=jax.ShapeDtypeStruct((n, 128), jnp.float32),
        in_specs=[_full_spec(op.shape) for op in operands],
        out_specs=_full_spec((n, 128)),
    )(*operands)
    return out[:, :32]


# ------------------------------------------------------------------ pure-JAX reference
def encoder_forward_ref(x, params):
    dn1 = jax.lax.conv_dimension_numbers(x.shape, params["conv1_w"].shape,
                                         ("NCHW", "OIHW", "NCHW"))
    y = jax.lax.conv_general_dilated(x, params["conv1_w"], (2, 2), "VALID",
                                     dimension_numbers=dn1)
    y = jax.nn.relu(y + params["conv1_b"][None, :, None, None])
    dn2 = jax.lax.conv_dimension_numbers(y.shape, params["conv2_w"].shape,
                                         ("NCHW", "OIHW", "NCHW"))
    y = jax.lax.conv_general_dilated(y, params["conv2_w"], (2, 2), "VALID",
                                     dimension_numbers=dn2)
    y = jax.nn.relu(y + params["conv2_b"][None, :, None, None])
    y = y.reshape(y.shape[0], 256)
    y = jax.nn.relu(y @ params["fc1_w"].T + params["fc1_b"])
    y = jax.nn.relu(y @ params["fc2_w"].T + params["fc2_b"])
    return y


# ------------------------------------------------------------------ main
if __name__ == "__main__":
    key = jax.random.PRNGKey(0)
    ks = jax.random.split(key, 9)

    # Deterministic synthetic parameters (PyTorch layer shapes).
    params = {
        "conv1_w": 0.1 * jax.random.normal(ks[0], (8, 1, 5, 5), jnp.float32),
        "conv1_b": 0.1 * jax.random.normal(ks[1], (8,), jnp.float32),
        "conv2_w": 0.1 * jax.random.normal(ks[2], (16, 8, 5, 5), jnp.float32),
        "conv2_b": 0.1 * jax.random.normal(ks[3], (16,), jnp.float32),
        "fc1_w": 0.05 * jax.random.normal(ks[4], (96, 256), jnp.float32),
        "fc1_b": 0.05 * jax.random.normal(ks[5], (96,), jnp.float32),
        "fc2_w": 0.05 * jax.random.normal(ks[6], (32, 96), jnp.float32),
        "fc2_b": 0.05 * jax.random.normal(ks[7], (32,), jnp.float32),
    }

    # Input must be 28x28x1 so conv1->conv2 yields the 256-dim flatten of .view(-1, 256).
    x = jax.random.normal(ks[8], (2, 1, 28, 28), jnp.float32)

    packed = prepare_params(params)            # one-time, offline weight packing
    fwd = jax.jit(encoder_forward)

    out = jax.block_until_ready(fwd(x, packed))
    assert out.shape == (2, 32), out.shape

    ref = jax.block_until_ready(encoder_forward_ref(x, params))
    assert jnp.allclose(out, ref, atol=1e-4, rtol=1e-4), \
        float(jnp.max(jnp.abs(out - ref)))

    print("KERNEL_OK")
</pallas_src>

<mosaic_0001>
module attributes {stable_mosaic.version = 11 : i64} {
  func.func @_encoder_kernel(%arg0: memref<8x384xf32, #tpu.memory_space<vmem>>, %arg1: memref<2x8xf32, #tpu.memory_space<vmem>>, %arg2: memref<384x512xf32, #tpu.memory_space<vmem>>, %arg3: memref<1x512xf32, #tpu.memory_space<vmem>>, %arg4: memref<512x256xf32, #tpu.memory_space<vmem>>, %arg5: memref<1x256xf32, #tpu.memory_space<vmem>>, %arg6: memref<8x256xf32, #tpu.memory_space<vmem>>, %arg7: memref<256x128xf32, #tpu.memory_space<vmem>>, %arg8: memref<1x128xf32, #tpu.memory_space<vmem>>, %arg9: memref<128x128xf32, #tpu.memory_space<vmem>>, %arg10: memref<1x128xf32, #tpu.memory_space<vmem>>, %arg11: memref<2x128xf32, #tpu.memory_space<vmem>>) attributes {dimension_semantics = [], scalar_prefetch = 0 : i64, scratch_operands = 0 : i64, tpu.core_type = #tpu.core_type<tc>} {
    %c0 = arith.constant 0 : index
    %c0_0 = arith.constant 0 : index
    %0 = vector.load %arg0[%c0, %c0_0] : memref<8x384xf32, #tpu.memory_space<vmem>>, vector<8x384xf32>
    %c0_1 = arith.constant 0 : index
    %c0_2 = arith.constant 0 : index
    %1 = vector.load %arg2[%c0_1, %c0_2] : memref<384x512xf32, #tpu.memory_space<vmem>>, vector<384x512xf32>
    %cst = arith.constant dense<0.000000e+00> : vector<8x512xf32>
    %2 = tpu.matmul %0, %1, %cst {dimension_numbers = #tpu.dot_dimension_numbers<[1], [0], [0], [1], [0, 0, 1, 1], [], []>} : vector<8x384xf32>, vector<384x512xf32>, vector<8x512xf32> -> vector<8x512xf32>
    %c0_3 = arith.constant 0 : index
    %c0_4 = arith.constant 0 : index
    %3 = vector.load %arg3[%c0_3, %c0_4] : memref<1x512xf32, #tpu.memory_space<vmem>>, vector<1x512xf32>
    %4 = vector.broadcast %3 : vector<1x512xf32> to vector<8x512xf32>
    %5 = arith.addf %2, %4 : vector<8x512xf32>
    %cst_5 = arith.constant 0.000000e+00 : f32
    %6 = vector.broadcast %cst_5 : f32 to vector<8x512xf32>
    %7 = arith.maximumf %5, %6 : vector<8x512xf32>
    %c0_6 = arith.constant 0 : index
    %c0_7 = arith.constant 0 : index
    %8 = vector.load %arg4[%c0_6, %c0_7] : memref<512x256xf32, #tpu.memory_space<vmem>>, vector<512x256xf32>
    %cst_8 = arith.constant dense<0.000000e+00> : vector<8x256xf32>
    %9 = tpu.matmul %7, %8, %cst_8 {dimension_numbers = #tpu.dot_dimension_numbers<[1], [0], [0], [1], [0, 0, 1, 1], [], []>} : vector<8x512xf32>, vector<512x256xf32>, vector<8x256xf32> -> vector<8x256xf32>
    %c0_9 = arith.constant 0 : index
    %c0_10 = arith.constant 0 : index
    %10 = vector.load %arg5[%c0_9, %c0_10] : memref<1x256xf32, #tpu.memory_space<vmem>>, vector<1x256xf32>
    %11 = vector.broadcast %10 : vector<1x256xf32> to vector<8x256xf32>
    %12 = arith.addf %9, %11 : vector<8x256xf32>
    %c0_11 = arith.constant 0 : index
    %c0_12 = arith.constant 0 : index
    %13 = vector.load %arg6[%c0_11, %c0_12] : memref<8x256xf32, #tpu.memory_space<vmem>>, vector<8x256xf32>
    %14 = arith.mulf %12, %13 : vector<8x256xf32>
    %cst_13 = arith.constant 0.000000e+00 : f32
    %15 = vector.broadcast %cst_13 : f32 to vector<8x256xf32>
    %16 = arith.maximumf %14, %15 : vector<8x256xf32>
    %c0_14 = arith.constant 0 : index
    %c0_15 = arith.constant 0 : index
    %17 = vector.load %arg1[%c0_14, %c0_15] : memref<2x8xf32, #tpu.memory_space<vmem>>, vector<2x8xf32>
    %cst_16 = arith.constant dense<0.000000e+00> : vector<2x256xf32>
    %18 = tpu.matmul %17, %16, %cst_16 {dimension_numbers = #tpu.dot_dimension_numbers<[1], [0], [0], [1], [0, 0, 1, 1], [], []>} : vector<2x8xf32>, vector<8x256xf32>, vector<2x256xf32> -> vector<2x256xf32>
    %c0_17 = arith.constant 0 : index
    %c0_18 = arith.constant 0 : index
    %19 = vector.load %arg7[%c0_17, %c0_18] : memref<256x128xf32, #tpu.memory_space<vmem>>, vector<256x128xf32>
    %cst_19 = arith.constant dense<0.000000e+00> : vector<2x128xf32>
    %20 = tpu.matmul %18, %19, %cst_19 {dimension_numbers = #tpu.dot_dimension_numbers<[1], [0], [0], [1], [0, 0, 1, 1], [], []>} : vector<2x256xf32>, vector<256x128xf32>, vector<2x128xf32> -> vector<2x128xf32>
    %c0_20 = arith.constant 0 : index
    %c0_21 = arith.constant 0 : index
    %21 = vector.load %arg8[%c0_20, %c0_21] : memref<1x128xf32, #tpu.memory_space<vmem>>, vector<1x128xf32>
    %22 = vector.broadcast %21 : vector<1x128xf32> to vector<2x128xf32>
    %23 = arith.addf %20, %22 : vector<2x128xf32>
    %cst_22 = arith.constant 0.000000e+00 : f32
    %24 = vector.broadcast %cst_22 : f32 to vector<2x128xf32>
    %25 = arith.maximumf %23, %24 : vector<2x128xf32>
    %c0_23 = arith.constant 0 : index
    %c0_24 = arith.constant 0 : index
    %26 = vector.load %arg9[%c0_23, %c0_24] : memref<128x128xf32, #tpu.memory_space<vmem>>, vector<128x128xf32>
    %cst_25 = arith.constant dense<0.000000e+00> : vector<2x128xf32>
    %27 = tpu.matmul %25, %26, %cst_25 {dimension_numbers = #tpu.dot_dimension_numbers<[1], [0], [0], [1], [0, 0, 1, 1], [], []>} : vector<2x128xf32>, vector<128x128xf32>, vector<2x128xf32> -> vector<2x128xf32>
    %c0_26 = arith.constant 0 : index
    %c0_27 = arith.constant 0 : index
    %28 = vector.load %arg10[%c0_26, %c0_27] : memref<1x128xf32, #tpu.memory_space<vmem>>, vector<1x128xf32>
    %29 = vector.broadcast %28 : vector<1x128xf32> to vector<2x128xf32>
    %30 = arith.addf %27, %29 : vector<2x128xf32>
    %cst_28 = arith.constant 0.000000e+00 : f32
    %31 = vector.broadcast %cst_28 : f32 to vector<2x128xf32>
    %32 = arith.maximumf %30, %31 : vector<2x128xf32>
    %c0_29 = arith.constant 0 : index
    %c0_30 = arith.constant 0 : index
    %33 = vector.load %arg11[%c0_29, %c0_30] : memref<2x128xf32, #tpu.memory_space<vmem>>, vector<2x128xf32>
    tpu.vector_store %arg11[%c0_29, %c0_30], %32 {strides = array<i32>} : memref<2x128xf32, #tpu.memory_space<vmem>>, vector<2x128xf32>,
    return
  }
}

</mosaic_0001>

<bundles_post_ra>
// kernel: tile.9
= control target key start
LH: loop header
LB: loop body
LE: loop exit
PB: predicated region body
PF: predicated region fallthrough
CT: control target
= control target key end

     0   :  { %s72_s0 = inlined_call_operand.vmem [shape: f32[2,4,256], index: 0, kind: input, shape index: {}]   ;;  %s73_s1 = inlined_call_operand.vmem [shape: f32[8,256], index: 1, kind: output, shape index: {}]  }
   0x1   :  { %v32_v0 = vld [vmem:[%s72_s0 + $0xc] sm:$0xf]  ;;  %v33_v1 = vld [vmem:[%s72_s0 + $0x8] sm:$0xf]  ;;  %v34_v2 = vld [vmem:[%s72_s0 + $0x4] sm:$0xf] }
   0x2   :  { %7 = vst [vmem:[#allocation0 + $0x8] sm:$0xf] %v32_v0  ;;  %v16_v3 = vld [vmem:[%s72_s0] sm:$0xf] }
   0x3   :  { %11 = vst [vmem:[#allocation0 + $0x18] sm:$0xf] %v33_v1 }
   0x4   :  { %15 = vst [vmem:[#allocation0] sm:$0xf] %v34_v2 }
   0x5   :  { %17 = vst [vmem:[#allocation0 + $0x10] sm:$0xf] %v16_v3 }
   0x9   :  { %v29_v4 = vld [vmem:[#allocation0 + $0x8] sm:$0xf]  }
   0xa   :  { %v25_v5 = vld [vmem:[#allocation0 + $0x18] sm:$0xf]   ;;  %37 = vst [vmem:[%s73_s1 + $0xc] sm:$0xf] %v29_v4  }
   0xb   :  { %v21_v6 = vld [vmem:[#allocation0] sm:$0xf]   ;;  %36 = vst [vmem:[%s73_s1 + $0x4] sm:$0xf] %v25_v5  }
   0xc   :  { %v18_v7 = vld [vmem:[#allocation0 + $0x10] sm:$0xf]   ;;  %35 = vst [vmem:[%s73_s1 + $0x8] sm:$0xf] %v21_v6  }
   0xd   :  { %19 = vst [vmem:[%s73_s1] sm:$0xf] %v18_v7  }

// kernel: encoder_forward.1
= control target key start
LH: loop header
LB: loop body
LE: loop exit
PB: predicated region body
PF: predicated region fallthrough
CT: control target
= control target key end

     0   :  { %16 = vsyncpa [#allocation3], 0  ;;  %s1365_s0 = inlined_call_operand.vmem [shape: f32[8,384], index: 0, kind: input, shape index: {}]   ;;  %s1366_s1 = inlined_call_operand.vmem [shape: f32[2,8], index: 1, kind: input, shape index: {}]   ;;  %s1367_s2 = inlined_call_operand.hbm [shape: f32[384,512], index: 2, kind: input, shape index: {}]   ;;  %s1368_s3 = inlined_call_operand.vmem [shape: f32[1,512], index: 3, kind: input, shape index: {}]   ;;  %s1369_s4 = inlined_call_operand.hbm [shape: f32[512,256], index: 4, kind: input, shape index: {}]   ;;  %s1370_s5 = inlined_call_operand.vmem [shape: f32[1,256], index: 5, kind: input, shape index: {}]   ;;  %s1371_s6 = inlined_call_operand.vmem [shape: f32[8,256], index: 6, kind: input, shape index: {}]   ;;  %s1372_s7 = inlined_call_operand.vmem [shape: f32[256,128], index: 7, kind: input, shape index: {}]   ;;  %s1373_s8 = inlined_call_operand.vmem [shape: f32[1,128], index: 8, kind: input, shape index: {}]   ;;  %s1374_s9 = inlined_call_operand.vmem [shape: f32[128,128], index: 9, kind: input, shape index: {}]   ;;  %s1375_s10 = inlined_call_operand.vmem [shape: f32[1,128], index: 10, kind: input, shape index: {}]   ;;  %s1376_s11 = inlined_call_operand.hbm [shape: f32[2,128], index: 11, kind: output, shape index: {}]  }
   0x1   :  { %17 = vsyncpa [#allocation6], 0 }
   0x2   :  { %18 = vsyncpa [#allocation4], 0  ;;  %s27_s19 = sshll.u32 %s1367_s2, 4  ;;  %s1091_s20 = smov [#allocation2]   ;;  %s28_s19 = int_to_ptr.hbm [resolvable:$true] %s27_s19 }
   0x3   :  { %s29_s21 = sshll.u32 %s1091_s20, 4  ;;  %s42_s24 = sshll.u32 %s1369_s4, 4  ;;  %s30_s21 = int_to_ptr.vmem [resolvable:$true] %s29_s21  ;;  %s43_s24 = int_to_ptr.hbm [resolvable:$true] %s42_s24 }
   0x4   :  { %s1092_s25 = smov 512   ;;  %s1093_s26 = smov 32  }
   0x5   :  { %35 = dma.hbm_to_vmem [thread:$0]  %s28_s19, 24576, %s30_s21, [#allocation3], %s1092_s25, %s1092_s25, %s1093_s26  }
   0x6   :  { %s1094_s27 = smov [#allocation5]   ;;  %s1095_s29 = smov 256  }
   0x7   :  { %s44_s28 = sshll.u32 %s1094_s27, 4  ;;  %s1096_s30 = smov 16   ;;  %s45_s28 = int_to_ptr.vmem [resolvable:$true] %s44_s28 }
   0x8   :  { %50 = dma.hbm_to_vmem [thread:$0]  %s43_s24, 16384, %s45_s28, [#allocation6], %s1095_s29, %s1095_s29, %s1096_s30  }
   0x9   :  { %1085 = dma.done.wait [#allocation3], 24576  }
   0xa   :  { %1086 = vsyncadd [#allocation3], 4294942720 }
   0xb   :  { %1087 = dma.done.wait [#allocation6], 16384  }
   0xc   :  { %1088 = vsyncadd [#allocation6], 4294950912  ;;  %v134_v0 = vld [vmem:[#allocation2 + $0x1e0] sm:$0xff]  ;;  %v135_v5 = vld [vmem:[#allocation2 + $0x1e8] sm:$0xff]  ;;  %vm821_vm0 = vcmask 64512   ;;  %s1097_s22 = smov [#allocation7]  }
   0xd   :  { %v262_v1 = vld [vmem:[#allocation2 + $0x5e0] sm:$0xff]  ;;  %276 = vmatpush.msra.mxu0 %v134_v0  ;;  %336 = vmatpush.msra.mxu3 %v135_v5  ;;  %v131_v9 = vld [vmem:[#allocation2 + $0x1c8] sm:$0xff]  ;;  %v136_v63 = vld [vmem:[#allocation2 + $0x1f0] sm:$0xff]  ;;  %s989_s23 = sshll.u32 %s1097_s22, 4  ;;  %s991_s24 = sshll.u32 %s1376_s11, 4  ;;  %s990_s23 = int_to_ptr.vmem [resolvable:$true] %s989_s23  ;;  %s992_s24 = int_to_ptr.hbm [resolvable:$true] %s991_s24 }
   0xe   :  { %v130_v2 = vld [vmem:[#allocation2 + $0x1c0] sm:$0xff]  ;;  %316 = vmatpush.msra.mxu2 %v262_v1  ;;  %v127_v13 = vld [vmem:[#allocation2 + $0x1a8] sm:$0xff]  ;;  %v200_v5 = vld [vmem:[#allocation2 + $0x3f0] sm:$0xff] }
   0xf   :  { %v198_v3 = vld [vmem:[#allocation2 + $0x3e0] sm:$0xff]  ;;  %277 = vmatpush.msra.mxu0 %v130_v2  ;;  %337 = vmatpush.msra.mxu3 %v131_v9  ;;  %v123_v15 = vld [vmem:[#allocation2 + $0x188] sm:$0xff]  ;;  %v196_v9 = vld [vmem:[#allocation2 + $0x3d0] sm:$0xff] }
  0x10   :  { %v258_v4 = vld [vmem:[#allocation2 + $0x5c0] sm:$0xff]  ;;  %296 = vmatpush.msra.mxu1 %v198_v3  ;;  %v119_v19 = vld [vmem:[#allocation2 + $0x168] sm:$0xff] }
  0x11   :  { %v126_v6 = vld [vmem:[#allocation2 + $0x1a0] sm:$0xff]  ;;  %317 = vmatpush.msra.mxu2 %v258_v4  ;;  %338 = vmatpush.msra.mxu3 %v127_v13  ;;  %v115_v23 = vld [vmem:[#allocation2 + $0x148] sm:$0xff]  ;;  %v132_v4 = vld [vmem:[#allocation2 + $0x1d0] sm:$0xff] }
  0x12   :  { %v194_v7 = vld [vmem:[#allocation2 + $0x3c0] sm:$0xff]  ;;  %278 = vmatpush.msra.mxu0 %v126_v6  ;;  %v111_v27 = vld [vmem:[#allocation2 + $0x128] sm:$0xff]  ;;  %v192_v13 = vld [vmem:[#allocation2 + $0x3b0] sm:$0xff] }
  0x13   :  { %v254_v8 = vld [vmem:[#allocation2 + $0x5a0] sm:$0xff]  ;;  %297 = vmatpush.msra.mxu1 %v194_v7  ;;  %339 = vmatpush.msra.mxu3 %v123_v15  ;;  %v107_v31 = vld [vmem:[#allocation2 + $0x108] sm:$0xff] }
  0x14   :  { %v190_v10 = vld [vmem:[#allocation2 + $0x3a0] sm:$0xff]  ;;  %318 = vmatpush.msra.mxu2 %v254_v8  ;;  %v103_v35 = vld [vmem:[#allocation2 + $0xe8] sm:$0xff]  ;;  %v128_v8 = vld [vmem:[#allocation2 + $0x1b0] sm:$0xff] }
  0x15   :  { %v122_v11 = vld [vmem:[#allocation2 + $0x180] sm:$0xff]  ;;  %298 = vmatpush.msra.mxu1 %v190_v10  ;;  %340 = vmatpush.msra.mxu3 %v119_v19  ;;  %v99_v39 = vld [vmem:[#allocation2 + $0xc8] sm:$0xff] }
  0x16   :  { %v250_v12 = vld [vmem:[#allocation2 + $0x580] sm:$0xff]  ;;  %279 = vmatpush.msra.mxu0 %v122_v11  ;;  %v95_v43 = vld [vmem:[#allocation2 + $0xa8] sm:$0xff] }
  0x17   :  { %v186_v14 = vld [vmem:[#allocation2 + $0x380] sm:$0xff]  ;;  %319 = vmatpush.msra.mxu2 %v250_v12  ;;  %341 = vmatpush.msra.mxu3 %v115_v23  ;;  %v91_v47 = vld [vmem:[#allocation2 + $0x88] sm:$0xff]  ;;  %v124_v12 = vld [vmem:[#allocation2 + $0x190] sm:$0xff] }
  0x18   :  { %v118_v16 = vld [vmem:[#allocation2 + $0x160] sm:$0xff]  ;;  %299 = vmatpush.msra.mxu1 %v186_v14  ;;  %v87_v51 = vld [vmem:[#allocation2 + $0x68] sm:$0xff] }
  0x19   :  { %v246_v17 = vld [vmem:[#allocation2 + $0x560] sm:$0xff]  ;;  %280 = vmatpush.msra.mxu0 %v118_v16  ;;  %342 = vmatpush.msra.mxu3 %v111_v27  ;;  %v83_v55 = vld [vmem:[#allocation2 + $0x48] sm:$0xff]  ;;  %v120_v16 = vld [vmem:[#allocation2 + $0x170] sm:$0xff] }
  0x1a   :  { %v182_v18 = vld [vmem:[#allocation2 + $0x360] sm:$0xff]  ;;  %320 = vmatpush.msra.mxu2 %v246_v17  ;;  %v79_v59 = vld [vmem:[#allocation2 + $0x28] sm:$0xff]  ;;  %v188_v17 = vld [vmem:[#allocation2 + $0x390] sm:$0xff] }
  0x1b   :  { %v114_v20 = vld [vmem:[#allocation2 + $0x140] sm:$0xff]  ;;  %300 = vmatpush.msra.mxu1 %v182_v18  ;;  %343 = vmatpush.msra.mxu3 %v107_v31  ;;  %v199_v62 = vld [vmem:[#allocation2 + $0x3e8] sm:$0xff] }
  0x1c   :  { %v242_v21 = vld [vmem:[#allocation2 + $0x540] sm:$0xff]  ;;  %281 = vmatpush.msra.mxu0 %v114_v20  ;;  %v75_v1 = vld [vmem:[#allocation2 + $0x8] sm:$0xff]  ;;  %v116_v20 = vld [vmem:[#allocation2 + $0x150] sm:$0xff] }
  0x1d   :  { %v178_v22 = vld [vmem:[#allocation2 + $0x340] sm:$0xff]  ;;  %321 = vmatpush.msra.mxu2 %v242_v21  ;;  %344 = vmatpush.msra.mxu3 %v103_v35  ;;  %v195_v2 = vld [vmem:[#allocation2 + $0x3c8] sm:$0xff]  ;;  %v184_v21 = vld [vmem:[#allocation2 + $0x370] sm:$0xff] }
  0x1e   :  { %v110_v24 = vld [vmem:[#allocation2 + $0x120] sm:$0xff]  ;;  %301 = vmatpush.msra.mxu1 %v178_v22  ;;  %v263_v3 = vld [vmem:[#allocation2 + $0x5e8] sm:$0xff] }
  0x1f   :  { %v238_v25 = vld [vmem:[#allocation2 + $0x520] sm:$0xff]  ;;  %282 = vmatpush.msra.mxu0 %v110_v24  ;;  %345 = vmatpush.msra.mxu3 %v99_v39  ;;  %v191_v6 = vld [vmem:[#allocation2 + $0x3a8] sm:$0xff]  ;;  %v112_v24 = vld [vmem:[#allocation2 + $0x130] sm:$0xff] }
  0x20   :  { %v174_v26 = vld [vmem:[#allocation2 + $0x320] sm:$0xff]  ;;  %322 = vmatpush.msra.mxu2 %v238_v25  ;;  %v259_v7 = vld [vmem:[#allocation2 + $0x5c8] sm:$0xff]  ;;  %v180_v25 = vld [vmem:[#allocation2 + $0x350] sm:$0xff] }
  0x21   :  { %v106_v28 = vld [vmem:[#allocation2 + $0x100] sm:$0xff]  ;;  %302 = vmatpush.msra.mxu1 %v174_v26  ;;  %346 = vmatpush.msra.mxu3 %v95_v43  ;;  %v187_v10 = vld [vmem:[#allocation2 + $0x388] sm:$0xff] }
  0x22   :  { %v234_v29 = vld [vmem:[#allocation2 + $0x500] sm:$0xff]  ;;  %283 = vmatpush.msra.mxu0 %v106_v28  ;;  %v255_v11 = vld [vmem:[#allocation2 + $0x5a8] sm:$0xff]  ;;  %v108_v28 = vld [vmem:[#allocation2 + $0x110] sm:$0xff] }
  0x23   :  { %v170_v30 = vld [vmem:[#allocation2 + $0x300] sm:$0xff]  ;;  %323 = vmatpush.msra.mxu2 %v234_v29  ;;  %347 = vmatpush.msra.mxu3 %v91_v47  ;;  %v183_v14 = vld [vmem:[#allocation2 + $0x368] sm:$0xff]  ;;  %v176_v29 = vld [vmem:[#allocation2 + $0x330] sm:$0xff] }
  0x24   :  { %v102_v32 = vld [vmem:[#allocation2 + $0xe0] sm:$0xff]  ;;  %303 = vmatpush.msra.mxu1 %v170_v30  ;;  %v251_v15 = vld [vmem:[#allocation2 + $0x588] sm:$0xff]  ;;  %v1172_v47 = vld [vmem:[%s1365_s0 + $0x10] sm:$0xff] }
  0x25   :  { %v230_v33 = vld [vmem:[#allocation2 + $0x4e0] sm:$0xff]  ;;  %284 = vmatpush.msra.mxu0 %v102_v32  ;;  %348 = vmatpush.msra.mxu3 %v87_v51  ;;  %v179_v18 = vld [vmem:[#allocation2 + $0x348] sm:$0xff]  ;;  %v104_v32 = vld [vmem:[#allocation2 + $0xf0] sm:$0xff] }
  0x26   :  { %v166_v34 = vld [vmem:[#allocation2 + $0x2e0] sm:$0xff]  ;;  %324 = vmatpush.msra.mxu2 %v230_v33  ;;  %v247_v19 = vld [vmem:[#allocation2 + $0x568] sm:$0xff]  ;;  %v172_v33 = vld [vmem:[#allocation2 + $0x310] sm:$0xff] }
  0x27   :  { %v98_v36 = vld [vmem:[#allocation2 + $0xc0] sm:$0xff]  ;;  %304 = vmatpush.msra.mxu1 %v166_v34  ;;  %349 = vmatpush.msra.mxu3 %v83_v55  ;;  %v175_v22 = vld [vmem:[#allocation2 + $0x328] sm:$0xff]  ;;  %v156_v51 = vld [vmem:[#allocation2 + $0x290] sm:$0xff] }
  0x28   :  { %v226_v37 = vld [vmem:[#allocation2 + $0x4c0] sm:$0xff]  ;;  %285 = vmatpush.msra.mxu0 %v98_v36  ;;  %v243_v23 = vld [vmem:[#allocation2 + $0x548] sm:$0xff]  ;;  %v100_v36 = vld [vmem:[#allocation2 + $0xd0] sm:$0xff] }
  0x29   :  { %v162_v38 = vld [vmem:[#allocation2 + $0x2c0] sm:$0xff]  ;;  %325 = vmatpush.msra.mxu2 %v226_v37  ;;  %350 = vmatpush.msra.mxu3 %v79_v59  ;;  %v171_v26 = vld [vmem:[#allocation2 + $0x308] sm:$0xff]  ;;  %v168_v37 = vld [vmem:[#allocation2 + $0x2f0] sm:$0xff] }
  0x2a   :  { %v94_v40 = vld [vmem:[#allocation2 + $0xa0] sm:$0xff]  ;;  %305 = vmatpush.msra.mxu1 %v162_v38  ;;  %v239_v27 = vld [vmem:[#allocation2 + $0x528] sm:$0xff]  ;;  %v84_v55 = vld [vmem:[#allocation2 + $0x50] sm:$0xff] }
  0x2b   :  { %v222_v41 = vld [vmem:[#allocation2 + $0x4a0] sm:$0xff]  ;;  %286 = vmatpush.msra.mxu0 %v94_v40  ;;  %351 = vmatpush.msra.mxu3 %v75_v1  ;;  %v167_v30 = vld [vmem:[#allocation2 + $0x2e8] sm:$0xff]  ;;  %v96_v40 = vld [vmem:[#allocation2 + $0xb0] sm:$0xff] }
  0x2c   :  { %v158_v42 = vld [vmem:[#allocation2 + $0x2a0] sm:$0xff]  ;;  %326 = vmatpush.msra.mxu2 %v222_v41  ;;  %v235_v31 = vld [vmem:[#allocation2 + $0x508] sm:$0xff]  ;;  %v164_v41 = vld [vmem:[#allocation2 + $0x2d0] sm:$0xff] }
  0x2d   :  { %v90_v44 = vld [vmem:[#allocation2 + $0x80] sm:$0xff]  ;;  %306 = vmatpush.msra.mxu1 %v158_v42  ;;  %416 = vmatpush.msrb.mxu3 %v200_v5  ;;  %v163_v34 = vld [vmem:[#allocation2 + $0x2c8] sm:$0xff]  ;;  %v80_v59 = vld [vmem:[#allocation2 + $0x30] sm:$0xff] }
  0x2e   :  { %v218_v45 = vld [vmem:[#allocation2 + $0x480] sm:$0xff]  ;;  %287 = vmatpush.msra.mxu0 %v90_v44  ;;  %v231_v35 = vld [vmem:[#allocation2 + $0x4e8] sm:$0xff]  ;;  %v92_v44 = vld [vmem:[#allocation2 + $0x90] sm:$0xff] }
  0x2f   :  { %v154_v46 = vld [vmem:[#allocation2 + $0x280] sm:$0xff]  ;;  %327 = vmatpush.msra.mxu2 %v218_v45  ;;  %417 = vmatpush.msrb.mxu3 %v196_v9  ;;  %v159_v38 = vld [vmem:[#allocation2 + $0x2a8] sm:$0xff]  ;;  %v160_v45 = vld [vmem:[#allocation2 + $0x2b0] sm:$0xff] }
  0x30   :  { %v86_v48 = vld [vmem:[#allocation2 + $0x60] sm:$0xff]  ;;  %307 = vmatpush.msra.mxu1 %v154_v46  ;;  %v227_v39 = vld [vmem:[#allocation2 + $0x4c8] sm:$0xff]  ;;  %v201_v1 = vld [vmem:[#allocation2 + $0x3f8] sm:$0xff] }
  0x31   :  { %v214_v49 = vld [vmem:[#allocation2 + $0x460] sm:$0xff]  ;;  %288 = vmatpush.msra.mxu0 %v86_v48  ;;  %418 = vmatpush.msrb.mxu3 %v192_v13  ;;  %v155_v42 = vld [vmem:[#allocation2 + $0x288] sm:$0xff]  ;;  %v260_v5 = vld [vmem:[#allocation2 + $0x5d0] sm:$0xff] }
  0x32   :  { %v150_v50 = vld [vmem:[#allocation2 + $0x260] sm:$0xff]  ;;  %328 = vmatpush.msra.mxu2 %v214_v49  ;;  %v223_v43 = vld [vmem:[#allocation2 + $0x4a8] sm:$0xff]  ;;  %v256_v9 = vld [vmem:[#allocation2 + $0x5b0] sm:$0xff] }
  0x33   :  { %v82_v52 = vld [vmem:[#allocation2 + $0x40] sm:$0xff]  ;;  %308 = vmatpush.msra.mxu1 %v150_v50  ;;  %419 = vmatpush.msrb.mxu3 %v188_v17  ;;  %v151_v48 = vld [vmem:[#allocation2 + $0x268] sm:$0xff]  ;;  %v88_v50 = vld [vmem:[#allocation2 + $0x70] sm:$0xff] }
  0x34   :  { %v210_v53 = vld [vmem:[#allocation2 + $0x440] sm:$0xff]  ;;  %289 = vmatpush.msra.mxu0 %v82_v52  ;;  %v219_v49 = vld [vmem:[#allocation2 + $0x488] sm:$0xff]  ;;  %v252_v13 = vld [vmem:[#allocation2 + $0x590] sm:$0xff] }
  0x35   :  { %v146_v54 = vld [vmem:[#allocation2 + $0x240] sm:$0xff]  ;;  %329 = vmatpush.msra.mxu2 %v210_v53  ;;  %420 = vmatpush.msrb.mxu3 %v184_v21  ;;  %v1179_v52 = vld [vmem:[%s1365_s0 + $0x8] sm:$0xff]  ;;  %v248_v17 = vld [vmem:[#allocation2 + $0x570] sm:$0xff] }
  0x36   :  { %v78_v56 = vld [vmem:[#allocation2 + $0x20] sm:$0xff]  ;;  %309 = vmatpush.msra.mxu1 %v146_v54  ;;  %v147_v53 = vld [vmem:[#allocation2 + $0x248] sm:$0xff]  ;;  %v244_v21 = vld [vmem:[#allocation2 + $0x550] sm:$0xff] }
  0x37   :  { %v206_v57 = vld [vmem:[#allocation2 + $0x420] sm:$0xff]  ;;  %290 = vmatpush.msra.mxu0 %v78_v56  ;;  %421 = vmatpush.msrb.mxu3 %v180_v25  ;;  %v215_v54 = vld [vmem:[#allocation2 + $0x468] sm:$0xff]  ;;  %v152_v56 = vld [vmem:[#allocation2 + $0x270] sm:$0xff] }
  0x38   :  { %v142_v58 = vld [vmem:[#allocation2 + $0x220] sm:$0xff]  ;;  %330 = vmatpush.msra.mxu2 %v206_v57  ;;  %v143_v57 = vld [vmem:[#allocation2 + $0x228] sm:$0xff]  ;;  %v240_v25 = vld [vmem:[#allocation2 + $0x530] sm:$0xff] }
  0x39   :  { %v74_v60 = vld [vmem:[#allocation2] sm:$0xff]  ;;  %310 = vmatpush.msra.mxu1 %v142_v58  ;;  %422 = vmatpush.msrb.mxu3 %v176_v29  ;;  %v211_v58 = vld [vmem:[#allocation2 + $0x448] sm:$0xff]  ;;  %v236_v29 = vld [vmem:[#allocation2 + $0x510] sm:$0xff] }
  0x3a   :  { %v202_v61 = vld [vmem:[#allocation2 + $0x400] sm:$0xff]  ;;  %291 = vmatpush.msra.mxu0 %v74_v60  ;;  %v148_v60 = vld [vmem:[#allocation2 + $0x250] sm:$0xff] }
  0x3b   :  { %v138_v0 = vld [vmem:[#allocation2 + $0x200] sm:$0xff]  ;;  %331 = vmatpush.msra.mxu2 %v202_v61  ;;  %423 = vmatpush.msrb.mxu3 %v172_v33  ;;  %v139_v61 = vld [vmem:[#allocation2 + $0x208] sm:$0xff]  ;;  %v232_v33 = vld [vmem:[#allocation2 + $0x4f0] sm:$0xff] }
  0x3c   :  { %356 = vmatpush.msrb.mxu0 %v199_v62  ;;  %311 = vmatpush.msra.mxu1 %v138_v0  ;;  %v1167_v46 = vld [vmem:[%s1365_s0] sm:$0xff]  ;;  %v207_v62 = vld [vmem:[#allocation2 + $0x428] sm:$0xff]  ;;  %v144_v0 = vld [vmem:[#allocation2 + $0x230] sm:$0xff] }
  0x3d   :  { %396 = vmatpush.msrb.mxu2 %v136_v63  ;;  %424 = vmatpush.msrb.mxu3 %v168_v37  ;;  %v76_v63 = vld [vmem:[#allocation2 + $0x10] sm:$0xff] }
  0x3e   :  { %357 = vmatpush.msrb.mxu0 %v195_v2  ;;  %376 = vmatpush.msrb.mxu1 %v263_v3  ;;  %v264_v2 = vld [vmem:[#allocation2 + $0x5f0] sm:$0xff]  ;;  %v203_v3 = vld [vmem:[#allocation2 + $0x408] sm:$0xff] }
  0x3f   :  { %397 = vmatpush.msrb.mxu2 %v132_v4  ;;  %425 = vmatpush.msrb.mxu3 %v164_v41  ;;  %v140_v4 = vld [vmem:[#allocation2 + $0x210] sm:$0xff] }
  0x40   :  { %358 = vmatpush.msrb.mxu0 %v191_v6  ;;  %377 = vmatpush.msrb.mxu1 %v259_v7  ;;  %v197_v6 = vld [vmem:[#allocation2 + $0x3d8] sm:$0xff]  ;;  %v228_v37 = vld [vmem:[#allocation2 + $0x4d0] sm:$0xff] }
  0x41   :  { %398 = vmatpush.msrb.mxu2 %v128_v8  ;;  %426 = vmatpush.msrb.mxu3 %v160_v45  ;;  %v265_v7 = vld [vmem:[#allocation2 + $0x5f8] sm:$0xff]  ;;  %v224_v41 = vld [vmem:[#allocation2 + $0x4b0] sm:$0xff] }
  0x42   :  { %359 = vmatpush.msrb.mxu0 %v187_v10  ;;  %378 = vmatpush.msrb.mxu1 %v255_v11  ;;  %v137_v8 = vld [vmem:[#allocation2 + $0x1f8] sm:$0xff] }
  0x43   :  { %399 = vmatpush.msrb.mxu2 %v124_v12  ;;  %292 = vmatmul.f32.vlgmr.msra.gmra.mxu0 %v1167_v46  ;;  %v193_v10 = vld [vmem:[#allocation2 + $0x3b8] sm:$0xff] }
  0x44   :  { %360 = vmatpush.msrb.mxu0 %v183_v14  ;;  %379 = vmatpush.msrb.mxu1 %v251_v15  ;;  %v261_v11 = vld [vmem:[#allocation2 + $0x5d8] sm:$0xff] }
  0x45   :  { %400 = vmatpush.msrb.mxu2 %v120_v16  ;;  %352 = vmatmul.f32.vlgmr.msra.gmra.mxu3 %v1167_v46  ;;  %v133_v12 = vld [vmem:[#allocation2 + $0x1d8] sm:$0xff] }
  0x46   :  { %361 = vmatpush.msrb.mxu0 %v179_v18  ;;  %380 = vmatpush.msrb.mxu1 %v247_v19  ;;  %v189_v14 = vld [vmem:[#allocation2 + $0x398] sm:$0xff] }
  0x47   :  { %401 = vmatpush.msrb.mxu2 %v116_v20  ;;  %427 = vmatpush.msrb.mxu3 %v156_v51  ;;  %v257_v15 = vld [vmem:[#allocation2 + $0x5b8] sm:$0xff] }
  0x48   :  { %362 = vmatpush.msrb.mxu0 %v175_v22  ;;  %381 = vmatpush.msrb.mxu1 %v243_v23  ;;  %v129_v16 = vld [vmem:[#allocation2 + $0x1b8] sm:$0xff] }
  0x49   :  { %402 = vmatpush.msrb.mxu2 %v112_v24  ;;  %312 = vmatmul.f32.vlgmr.msra.gmra.mxu1 %v1179_v52  ;;  %v185_v18 = vld [vmem:[#allocation2 + $0x378] sm:$0xff] }
  0x4a   :  { %363 = vmatpush.msrb.mxu0 %v171_v26  ;;  %382 = vmatpush.msrb.mxu1 %v239_v27  ;;  %v253_v19 = vld [vmem:[#allocation2 + $0x598] sm:$0xff] }
  0x4b   :  { %403 = vmatpush.msrb.mxu2 %v108_v28  ;;  %428 = vmatpush.msrb.mxu3 %v152_v56  ;;  %v125_v20 = vld [vmem:[#allocation2 + $0x198] sm:$0xff] }
  0x4c   :  { %364 = vmatpush.msrb.mxu0 %v167_v30  ;;  %383 = vmatpush.msrb.mxu1 %v235_v31  ;;  %v181_v22 = vld [vmem:[#allocation2 + $0x358] sm:$0xff] }
  0x4d   :  { %404 = vmatpush.msrb.mxu2 %v104_v32  ;;  %429 = vmatpush.msrb.mxu3 %v148_v60  ;;  %v249_v23 = vld [vmem:[#allocation2 + $0x578] sm:$0xff] }
  0x4e   :  { %365 = vmatpush.msrb.mxu0 %v163_v34  ;;  %384 = vmatpush.msrb.mxu1 %v231_v35  ;;  %v121_v24 = vld [vmem:[#allocation2 + $0x178] sm:$0xff] }
  0x4f   :  { %405 = vmatpush.msrb.mxu2 %v100_v36  ;;  %430 = vmatpush.msrb.mxu3 %v144_v0  ;;  %v177_v26 = vld [vmem:[#allocation2 + $0x338] sm:$0xff] }
  0x50   :  { %366 = vmatpush.msrb.mxu0 %v159_v38  ;;  %385 = vmatpush.msrb.mxu1 %v227_v39  ;;  %v245_v27 = vld [vmem:[#allocation2 + $0x558] sm:$0xff] }
  0x51   :  { %406 = vmatpush.msrb.mxu2 %v96_v40  ;;  %431 = vmatpush.msrb.mxu3 %v140_v4  ;;  %v117_v28 = vld [vmem:[#allocation2 + $0x158] sm:$0xff] }
  0x52   :  { %367 = vmatpush.msrb.mxu0 %v155_v42  ;;  %386 = vmatpush.msrb.mxu1 %v223_v43  ;;  %v173_v30 = vld [vmem:[#allocation2 + $0x318] sm:$0xff] }
  0x53   :  { %407 = vmatpush.msrb.mxu2 %v92_v44  ;;  %496 = vmatpush.msra.mxu3 %v265_v7  ;;  %v241_v31 = vld [vmem:[#allocation2 + $0x538] sm:$0xff]  ;;  %v220_v44 = vld [vmem:[#allocation2 + $0x490] sm:$0xff]  ;;  %v548_v7 = vld [vmem:[#allocation5 + $0xe0] sm:$0xff] }
  0x54   :  { %332 = vmatmul.f32.vlgmr.msra.gmra.mxu2 %v1172_v47  ;;  %368 = vmatpush.msrb.mxu0 %v151_v48  ;;  %v113_v32 = vld [vmem:[#allocation2 + $0x138] sm:$0xff] }
  0x55   :  { %387 = vmatpush.msrb.mxu1 %v219_v49  ;;  %408 = vmatpush.msrb.mxu2 %v88_v50  ;;  %v169_v34 = vld [vmem:[#allocation2 + $0x2f8] sm:$0xff]  ;;  %v216_v50 = vld [vmem:[#allocation2 + $0x470] sm:$0xff] }
  0x56   :  { %369 = vmatpush.msrb.mxu0 %v147_v53  ;;  %497 = vmatpush.msra.mxu3 %v261_v11  ;;  %v237_v35 = vld [vmem:[#allocation2 + $0x518] sm:$0xff]  ;;  %v580_v11 = vld [vmem:[#allocation5 + $0x1e0] sm:$0xff] }
  0x57   :  { %388 = vmatpush.msrb.mxu1 %v215_v54  ;;  %409 = vmatpush.msrb.mxu2 %v84_v55  ;;  %v109_v36 = vld [vmem:[#allocation2 + $0x118] sm:$0xff]  ;;  %v212_v55 = vld [vmem:[#allocation2 + $0x450] sm:$0xff] }
  0x58   :  { %370 = vmatpush.msrb.mxu0 %v143_v57  ;;  %498 = vmatpush.msra.mxu3 %v257_v15  ;;  %v165_v38 = vld [vmem:[#allocation2 + $0x2d8] sm:$0xff]  ;;  %v542_v15 = vld [vmem:[#allocation5 + $0xb0] sm:$0xff] }
  0x59   :  { %389 = vmatpush.msrb.mxu1 %v211_v58  ;;  %410 = vmatpush.msrb.mxu2 %v80_v59  ;;  %v233_v39 = vld [vmem:[#allocation2 + $0x4f8] sm:$0xff]  ;;  %v208_v59 = vld [vmem:[#allocation2 + $0x430] sm:$0xff] }
  0x5a   :  { %371 = vmatpush.msrb.mxu0 %v139_v61  ;;  %499 = vmatpush.msra.mxu3 %v253_v19  ;;  %v105_v40 = vld [vmem:[#allocation2 + $0xf8] sm:$0xff]  ;;  %v606_v19 = vld [vmem:[#allocation5 + $0x2b0] sm:$0xff] }
  0x5b   :  { %390 = vmatpush.msrb.mxu1 %v207_v62  ;;  %411 = vmatpush.msrb.mxu2 %v76_v63  ;;  %v161_v42 = vld [vmem:[#allocation2 + $0x2b8] sm:$0xff]  ;;  %v204_v63 = vld [vmem:[#allocation2 + $0x410] sm:$0xff] }
  0x5c   :  { %372 = vmatmul.f32.vlgmr.msrb.gmra.mxu0 %v1179_v52  ;;  %500 = vmatpush.msra.mxu3 %v249_v23  ;;  %v229_v43 = vld [vmem:[#allocation2 + $0x4d8] sm:$0xff]  ;;  %v570_v23 = vld [vmem:[#allocation5 + $0x190] sm:$0xff] }
  0x5d   :  { %476 = vmatpush.msra.mxu2 %v201_v1  ;;  %436 = vmatpush.msra.mxu0 %v264_v2  ;;  %v101_v45 = vld [vmem:[#allocation2 + $0xd8] sm:$0xff] }
  0x5e   :  { %391 = vmatpush.msrb.mxu1 %v203_v3  ;;  %501 = vmatpush.msra.mxu3 %v245_v27  ;;  %v157_v48 = vld [vmem:[#allocation2 + $0x298] sm:$0xff]  ;;  %v566_v27 = vld [vmem:[#allocation5 + $0x170] sm:$0xff] }
  0x5f   :  { %392 = vmatmul.f32.vlgmr.msrb.gmra.mxu1 %v1172_v47  ;;  %437 = vmatpush.msra.mxu0 %v260_v5  ;;  %v225_v49 = vld [vmem:[#allocation2 + $0x4b8] sm:$0xff]  ;;  %v550_v5 = vld [vmem:[#allocation5 + $0xf0] sm:$0xff] }
  0x60   :  { %477 = vmatpush.msra.mxu2 %v197_v6  ;;  %456 = vmatpush.msra.mxu1 %v137_v8  ;;  %v97_v51 = vld [vmem:[#allocation2 + $0xb8] sm:$0xff]  ;;  %v582_v8 = vld [vmem:[#allocation5 + $0x1f0] sm:$0xff] }
  0x61   :  { %438 = vmatpush.msra.mxu0 %v256_v9  ;;  %502 = vmatpush.msra.mxu3 %v241_v31  ;;  %v153_v53 = vld [vmem:[#allocation2 + $0x278] sm:$0xff]  ;;  %v614_v9 = vld [vmem:[#allocation5 + $0x2f0] sm:$0xff] }
  0x62   :  { %478 = vmatpush.msra.mxu2 %v193_v10  ;;  %457 = vmatpush.msra.mxu1 %v133_v12  ;;  %v221_v54 = vld [vmem:[#allocation2 + $0x498] sm:$0xff]  ;;  %v546_v10 = vld [vmem:[#allocation5 + $0xd0] sm:$0xff]  ;;  %v612_v12 = vld [vmem:[#allocation5 + $0x2e0] sm:$0xff] }
  0x63   :  { %439 = vmatpush.msra.mxu0 %v252_v13  ;;  %503 = vmatpush.msra.mxu3 %v237_v35  ;;  %v93_v56 = vld [vmem:[#allocation2 + $0x98] sm:$0xff]  ;;  %v544_v13 = vld [vmem:[#allocation5 + $0xc0] sm:$0xff]  ;;  %v562_v31 = vld [vmem:[#allocation5 + $0x150] sm:$0xff] }
  0x64   :  { %479 = vmatpush.msra.mxu2 %v189_v14  ;;  %458 = vmatpush.msra.mxu1 %v129_v16  ;;  %v149_v57 = vld [vmem:[#allocation2 + $0x258] sm:$0xff]  ;;  %v610_v14 = vld [vmem:[#allocation5 + $0x2d0] sm:$0xff]  ;;  %v576_v16 = vld [vmem:[#allocation5 + $0x1c0] sm:$0xff] }
  0x65   :  { %440 = vmatpush.msra.mxu0 %v248_v17  ;;  %504 = vmatpush.msra.mxu3 %v233_v39  ;;  %v217_v58 = vld [vmem:[#allocation2 + $0x478] sm:$0xff]  ;;  %v608_v17 = vld [vmem:[#allocation5 + $0x2c0] sm:$0xff]  ;;  %v558_v35 = vld [vmem:[#allocation5 + $0x130] sm:$0xff] }
  0x66   :  { %480 = vmatpush.msra.mxu2 %v185_v18  ;;  %459 = vmatpush.msra.mxu1 %v125_v20  ;;  %v89_v60 = vld [vmem:[#allocation2 + $0x78] sm:$0xff]  ;;  %v646_v18 = vld [vmem:[#allocation5 + $0x3f0] sm:$0xff] }
  0x67   :  { %441 = vmatpush.msra.mxu0 %v244_v21  ;;  %505 = vmatpush.msra.mxu3 %v229_v43  ;;  %v145_v61 = vld [vmem:[#allocation2 + $0x238] sm:$0xff]  ;;  %v538_v20 = vld [vmem:[#allocation5 + $0x90] sm:$0xff]  ;;  %v572_v21 = vld [vmem:[#allocation5 + $0x1a0] sm:$0xff] }
  0x68   :  { %481 = vmatpush.msra.mxu2 %v181_v22  ;;  %460 = vmatpush.msra.mxu1 %v121_v24  ;;  %v213_v62 = vld [vmem:[#allocation2 + $0x458] sm:$0xff]  ;;  %v536_v22 = vld [vmem:[#allocation5 + $0x80] sm:$0xff]  ;;  %v534_v24 = vld [vmem:[#allocation5 + $0x70] sm:$0xff] }
  0x69   :  { %442 = vmatpush.msra.mxu0 %v240_v25  ;;  %412 = vmatmul.f32.vlgmr.msrb.gmra.mxu2 %v1167_v46  ;;  %v85_v0 = vld [vmem:[#allocation2 + $0x58] sm:$0xff]  ;;  %v568_v25 = vld [vmem:[#allocation5 + $0x180] sm:$0xff] }
  0x6a   :  { %482 = vmatpush.msra.mxu2 %v177_v26  ;;  %461 = vmatpush.msra.mxu1 %v117_v28  ;;  %v141_v1 = vld [vmem:[#allocation2 + $0x218] sm:$0xff]  ;;  %v532_v26 = vld [vmem:[#allocation5 + $0x60] sm:$0xff]  ;;  %v530_v28 = vld [vmem:[#allocation5 + $0x50] sm:$0xff] }
  0x6b   :  { %443 = vmatpush.msra.mxu0 %v236_v29  ;;  %506 = vmatpush.msra.mxu3 %v225_v49  ;;  %v209_v2 = vld [vmem:[#allocation2 + $0x438] sm:$0xff]  ;;  %v564_v29 = vld [vmem:[#allocation5 + $0x160] sm:$0xff] }
  0x6c   :  { %483 = vmatpush.msra.mxu2 %v173_v30  ;;  %462 = vmatpush.msra.mxu1 %v113_v32  ;;  %v81_v3 = vld [vmem:[#allocation2 + $0x38] sm:$0xff]  ;;  %v528_v30 = vld [vmem:[#allocation5 + $0x40] sm:$0xff]  ;;  %v526_v32 = vld [vmem:[#allocation5 + $0x30] sm:$0xff] }
  0x6d   :  { %444 = vmatpush.msra.mxu0 %v232_v33  ;;  %432 = vmatmul.f32.vlgmr.msrb.gmra.mxu3 %v1179_v52  ;;  %v205_v4 = vld [vmem:[#allocation2 + $0x418] sm:$0xff]  ;;  %v560_v33 = vld [vmem:[#allocation5 + $0x140] sm:$0xff] }
  0x6e   :  { %484 = vmatpush.msra.mxu2 %v169_v34  ;;  %463 = vmatpush.msra.mxu1 %v109_v36  ;;  %v77_v6 = vld [vmem:[#allocation2 + $0x18] sm:$0xff]  ;;  %v524_v34 = vld [vmem:[#allocation5 + $0x20] sm:$0xff]  ;;  %v522_v36 = vld [vmem:[#allocation5 + $0x10] sm:$0xff] }
  0x6f   :  { %445 = vmatpush.msra.mxu0 %v228_v37  ;;  %507 = vmatpush.msra.mxu3 %v221_v54  ;;  %v556_v37 = vld [vmem:[#allocation5 + $0x120] sm:$0xff]  ;;  %v551_v39 = vld [vmem:[#allocation5 + $0xf8] sm:$0xff] }
  0x70   :  { %485 = vmatpush.msra.mxu2 %v165_v38  ;;  %464 = vmatpush.msra.mxu1 %v105_v40  ;;  %v520_v38 = vld [vmem:[#allocation5] sm:$0xff]  ;;  %v554_v40 = vld [vmem:[#allocation5 + $0x110] sm:$0xff]  ;;  %v583_v43 = vld [vmem:[#allocation5 + $0x1f8] sm:$0xff] }
  0x71   :  { %446 = vmatpush.msra.mxu0 %v224_v41  ;;  %508 = vmatpush.msra.mxu3 %v217_v58  ;;  %v549_v41 = vld [vmem:[#allocation5 + $0xe8] sm:$0xff]  ;;  %v579_v49 = vld [vmem:[#allocation5 + $0x1d8] sm:$0xff]  ;;  %v604_v54 = vld [vmem:[#allocation5 + $0x2a0] sm:$0xff] }
  0x72   :  { %486 = vmatpush.msra.mxu2 %v161_v42  ;;  %465 = vmatpush.msra.mxu1 %v101_v45  ;;  %v552_v42 = vld [vmem:[#allocation5 + $0x100] sm:$0xff]  ;;  %v581_v45 = vld [vmem:[#allocation5 + $0x1e8] sm:$0xff]  ;;  %v602_v58 = vld [vmem:[#allocation5 + $0x290] sm:$0xff] }
  0x73   :  { %447 = vmatpush.msra.mxu0 %v220_v44  ;;  %509 = vmatpush.msra.mxu3 %v213_v62  ;;  %v547_v44 = vld [vmem:[#allocation5 + $0xd8] sm:$0xff]  ;;  %v600_v62 = vld [vmem:[#allocation5 + $0x280] sm:$0xff] }
  0x74   :  { %487 = vmatpush.msra.mxu2 %v157_v48  ;;  %466 = vmatpush.msra.mxu1 %v97_v51  ;;  %v545_v48 = vld [vmem:[#allocation5 + $0xc8] sm:$0xff] }
  0x75   :  { %448 = vmatpush.msra.mxu0 %v216_v50  ;;  %510 = vmatpush.msra.mxu3 %v209_v2  ;;  %v543_v50 = vld [vmem:[#allocation5 + $0xb8] sm:$0xff]  ;;  %v577_v51 = vld [vmem:[#allocation5 + $0x1c8] sm:$0xff]  ;;  %v598_v2 = vld [vmem:[#allocation5 + $0x270] sm:$0xff] }
  0x76   :  { %488 = vmatpush.msra.mxu2 %v153_v53  ;;  %467 = vmatpush.msra.mxu1 %v93_v56  ;;  %v541_v53 = vld [vmem:[#allocation5 + $0xa8] sm:$0xff]  ;;  %v539_v56 = vld [vmem:[#allocation5 + $0x98] sm:$0xff] }
  0x77   :  { %449 = vmatpush.msra.mxu0 %v212_v55  ;;  %511 = vmatpush.msra.mxu3 %v205_v4  ;;  %v644_v55 = vld [vmem:[#allocation5 + $0x3e0] sm:$0xff]  ;;  %v533_v4 = vld [vmem:[#allocation5 + $0x68] sm:$0xff] }
  0x78   :  { %489 = vmatpush.msra.mxu2 %v149_v57  ;;  %468 = vmatpush.msra.mxu1 %v89_v60  ;;  %v575_v57 = vld [vmem:[#allocation5 + $0x1b8] sm:$0xff]  ;;  %v537_v60 = vld [vmem:[#allocation5 + $0x88] sm:$0xff] }
  0x79   :  { %450 = vmatpush.msra.mxu0 %v208_v59  ;;  %512 = vmatmul.f32.vlgmr.msra.gmra.mxu3 %v1172_v47  ;;  %v642_v59 = vld [vmem:[#allocation5 + $0x3d0] sm:$0xff] }
  0x7a   :  { %490 = vmatpush.msra.mxu2 %v145_v61  ;;  %469 = vmatpush.msra.mxu1 %v85_v0  ;;  %v573_v61 = vld [vmem:[#allocation5 + $0x1a8] sm:$0xff]  ;;  %v535_v0 = vld [vmem:[#allocation5 + $0x78] sm:$0xff] }
  0x7b   :  { %451 = vmatpush.msra.mxu0 %v204_v63  ;;  %714 = vmatpush.msrb.mxu3 %v646_v18  ;;  %v640_v63 = vld [vmem:[#allocation5 + $0x3c0] sm:$0xff]  ;;  %v525_v18 = vld [vmem:[#allocation5 + $0x28] sm:$0xff] }
  0x7c   :  { %491 = vmatpush.msra.mxu2 %v141_v1  ;;  %452 = vmatmul.f32.vlgmr.msra.gmra.mxu0 %v1172_v47  ;;  %v540_v47 = vld [vmem:[#allocation5 + $0xa0] sm:$0xff]  ;;  %v571_v1 = vld [vmem:[#allocation5 + $0x198] sm:$0xff] }
  0x7d   :  { %492 = vmatmul.f32.vlgmr.msra.gmra.mxu2 %v1179_v52  ;;  %470 = vmatpush.msra.mxu1 %v81_v3  ;;  %v578_v52 = vld [vmem:[#allocation5 + $0x1d0] sm:$0xff] }
  0x7e   :  { %654 = vmatpush.msrb.mxu0 %v550_v5  ;;  %694 = vmatpush.msrb.mxu2 %v614_v9  ;;  %v638_v3 = vld [vmem:[#allocation5 + $0x3b0] sm:$0xff]  ;;  %v569_v5 = vld [vmem:[#allocation5 + $0x188] sm:$0xff]  ;;  %v567_v9 = vld [vmem:[#allocation5 + $0x178] sm:$0xff] }
  0x7f   :  { %471 = vmatpush.msra.mxu1 %v77_v6  ;;  %715 = vmatpush.msrb.mxu3 %v644_v55  ;;  %v596_v6 = vld [vmem:[#allocation5 + $0x260] sm:$0xff] }
  0x80   :  { %472 = vmatmul.f32.vlgmr.msra.gmra.mxu1 %v1167_v46  ;;  %655 = vmatpush.msrb.mxu0 %v548_v7  ;;  %v574_v46 = vld [vmem:[#allocation5 + $0x1b0] sm:$0xff]  ;;  %v636_v7 = vld [vmem:[#allocation5 + $0x3a0] sm:$0xff] }
  0x81   :  { %674 = vmatpush.msrb.mxu1 %v582_v8  ;;  %695 = vmatpush.msrb.mxu2 %v612_v12  ;;  %v531_v8 = vld [vmem:[#allocation5 + $0x58] sm:$0xff]  ;;  %v529_v12 = vld [vmem:[#allocation5 + $0x48] sm:$0xff] }
  0x82   :  { %656 = vmatpush.msrb.mxu0 %v546_v10  ;;  %716 = vmatpush.msrb.mxu3 %v642_v59  ;;  %v594_v10 = vld [vmem:[#allocation5 + $0x250] sm:$0xff]  ;;  %v641_v59 = vld [vmem:[#allocation5 + $0x3c8] sm:$0xff] }
  0x83   :  { %675 = vmatpush.msrb.mxu1 %v580_v11  ;;  %696 = vmatpush.msrb.mxu2 %v610_v14  ;;  %v634_v11 = vld [vmem:[#allocation5 + $0x390] sm:$0xff]  ;;  %v632_v14 = vld [vmem:[#allocation5 + $0x380] sm:$0xff] }
  0x84   :  { %657 = vmatpush.msrb.mxu0 %v544_v13  ;;  %717 = vmatpush.msrb.mxu3 %v640_v63  ;;  %v565_v13 = vld [vmem:[#allocation5 + $0x168] sm:$0xff]  ;;  %v639_v63 = vld [vmem:[#allocation5 + $0x3b8] sm:$0xff] }
  0x85   :  { %676 = vmatpush.msrb.mxu1 %v578_v52  ;;  %697 = vmatpush.msrb.mxu2 %v608_v17  ;;  %v592_v52 = vld [vmem:[#allocation5 + $0x240] sm:$0xff]  ;;  %v590_v17 = vld [vmem:[#allocation5 + $0x230] sm:$0xff] }
  0x86   :  { %658 = vmatpush.msrb.mxu0 %v542_v15  ;;  %718 = vmatpush.msrb.mxu3 %v638_v3  ;;  %v527_v15 = vld [vmem:[#allocation5 + $0x38] sm:$0xff]  ;;  %v637_v3 = vld [vmem:[#allocation5 + $0x3a8] sm:$0xff] }
  0x87   :  { %677 = vmatpush.msrb.mxu1 %v576_v16  ;;  %698 = vmatpush.msrb.mxu2 %v606_v19  ;;  %v563_v16 = vld [vmem:[#allocation5 + $0x158] sm:$0xff]  ;;  %v588_v19 = vld [vmem:[#allocation5 + $0x220] sm:$0xff] }
  0x88   :  { %659 = vmatpush.msrb.mxu0 %v540_v47  ;;  %719 = vmatpush.msrb.mxu3 %v636_v7  ;;  %v630_v47 = vld [vmem:[#allocation5 + $0x370] sm:$0xff]  ;;  %v635_v7 = vld [vmem:[#allocation5 + $0x398] sm:$0xff] }
  0x89   :  { %678 = vmatpush.msrb.mxu1 %v574_v46  ;;  %699 = vmatpush.msrb.mxu2 %v604_v54  ;;  %v561_v46 = vld [vmem:[#allocation5 + $0x148] sm:$0xff] }
  0x8a   :  { %660 = vmatpush.msrb.mxu0 %v538_v20  ;;  %720 = vmatpush.msrb.mxu3 %v634_v11  ;;  %v628_v20 = vld [vmem:[#allocation5 + $0x360] sm:$0xff]  ;;  %v591_v11 = vld [vmem:[#allocation5 + $0x238] sm:$0xff] }
  0x8b   :  { %679 = vmatpush.msrb.mxu1 %v572_v21  ;;  %700 = vmatpush.msrb.mxu2 %v602_v58  ;;  %v523_v21 = vld [vmem:[#allocation5 + $0x18] sm:$0xff]  ;;  %v601_v58 = vld [vmem:[#allocation5 + $0x288] sm:$0xff] }
  0x8c   :  { %661 = vmatpush.msrb.mxu0 %v536_v22  ;;  %721 = vmatpush.msrb.mxu3 %v632_v14  ;;  %v559_v22 = vld [vmem:[#allocation5 + $0x138] sm:$0xff] }
  0x8d   :  { %680 = vmatpush.msrb.mxu1 %v570_v23  ;;  %701 = vmatpush.msrb.mxu2 %v600_v62  ;;  %v586_v23 = vld [vmem:[#allocation5 + $0x210] sm:$0xff]  ;;  %v599_v62 = vld [vmem:[#allocation5 + $0x278] sm:$0xff] }
  0x8e   :  { %662 = vmatpush.msrb.mxu0 %v534_v24  ;;  %722 = vmatpush.msrb.mxu3 %v630_v47  ;;  %v626_v24 = vld [vmem:[#allocation5 + $0x350] sm:$0xff]  ;;  %v587_v14 = vld [vmem:[#allocation5 + $0x218] sm:$0xff] }
  0x8f   :  { %681 = vmatpush.msrb.mxu1 %v568_v25  ;;  %702 = vmatpush.msrb.mxu2 %v598_v2  ;;  %v521_v25 = vld [vmem:[#allocation5 + $0x8] sm:$0xff]  ;;  %v623_v47 = vld [vmem:[#allocation5 + $0x338] sm:$0xff] }
  0x90   :  { %663 = vmatpush.msrb.mxu0 %v532_v26  ;;  %723 = vmatpush.msrb.mxu3 %v628_v20  ;;  %v557_v26 = vld [vmem:[#allocation5 + $0x128] sm:$0xff] }
  0x91   :  { %682 = vmatpush.msrb.mxu1 %v566_v27  ;;  %703 = vmatpush.msrb.mxu2 %v596_v6  ;;  %v584_v27 = vld [vmem:[#allocation5 + $0x200] sm:$0xff]  ;;  %v597_v2 = vld [vmem:[#allocation5 + $0x268] sm:$0xff]  ;;  %v595_v6 = vld [vmem:[#allocation5 + $0x258] sm:$0xff] }
  0x92   :  { %664 = vmatpush.msrb.mxu0 %v530_v28  ;;  %v624_v28 = vld [vmem:[#allocation5 + $0x340] sm:$0xff]  ;;  %724 = vmatpush.msrb.mxu3 %v626_v24 }
  0x93   :  { %683 = vmatpush.msrb.mxu1 %v564_v29  ;;  %704 = vmatpush.msrb.mxu2 %v594_v10  ;;  %v555_v29 = vld [vmem:[#allocation5 + $0x118] sm:$0xff]  ;;  %v633_v10 = vld [vmem:[#allocation5 + $0x388] sm:$0xff] }
  0x94   :  { %665 = vmatpush.msrb.mxu0 %v528_v30  ;;  %v615_v30 = vld [vmem:[#allocation5 + $0x2f8] sm:$0xff]  ;;  %725 = vmatpush.msrb.mxu3 %v624_v28 }
  0x95   :  { %684 = vmatpush.msrb.mxu1 %v562_v31  ;;  %705 = vmatpush.msrb.mxu2 %v592_v52  ;;  %v622_v31 = vld [vmem:[#allocation5 + $0x330] sm:$0xff]  ;;  %v629_v52 = vld [vmem:[#allocation5 + $0x368] sm:$0xff] }
  0x96   :  { %666 = vmatpush.msrb.mxu0 %v526_v32  ;;  %v553_v32 = vld [vmem:[#allocation5 + $0x108] sm:$0xff]  ;;  %726 = vmatpush.msrb.mxu3 %v622_v31 }
  0x97   :  { %685 = vmatpush.msrb.mxu1 %v560_v33  ;;  %706 = vmatpush.msrb.mxu2 %v590_v17  ;;  %v613_v33 = vld [vmem:[#allocation5 + $0x2e8] sm:$0xff] }
  0x98   :  { %667 = vmatpush.msrb.mxu0 %v524_v34  ;;  %v1194_v34 = vld [vmem:[%s1368_s3] sm:$0xf]  ;;  %v625_v17 = vld [vmem:[#allocation5 + $0x348] sm:$0xff] }
  0x99   :  { %686 = vmatpush.msrb.mxu1 %v558_v35  ;;  %707 = vmatpush.msrb.mxu2 %v588_v19  ;;  %v620_v35 = vld [vmem:[#allocation5 + $0x320] sm:$0xff]  ;;  %v269_v54 = vperm.slane %v1194_v34, 1  ;;  %v617_v19 = vld [vmem:[#allocation5 + $0x308] sm:$0xff]  ;;  %v270_v20 = vperm.slane %v1194_v34, 2 }
  0x9a   :  { %668 = vmatpush.msrb.mxu0 %v522_v36  ;;  %v611_v36 = vld [vmem:[#allocation5 + $0x2d8] sm:$0xff]  ;;  %727 = vmatpush.msrb.mxu3 %v620_v35 }
  0x9b   :  { %687 = vmatpush.msrb.mxu1 %v556_v37  ;;  %708 = vmatpush.msrb.mxu2 %v586_v23  ;;  %v618_v37 = vld [vmem:[#allocation5 + $0x310] sm:$0xff] }
  0x9c   :  { %669 = vmatpush.msrb.mxu0 %v520_v38  ;;  %v268_v38 = vperm.slane %v1194_v34, 0  ;;  %728 = vmatpush.msrb.mxu3 %v618_v37  ;;  %v880_v37 = vld [vmem:[%s1372_s7 + $0x78] sm:$0xff] }
  0x9d   :  { %688 = vmatpush.msrb.mxu1 %v554_v40  ;;  %709 = vmatpush.msrb.mxu2 %v584_v27  ;;  %v616_v40 = vld [vmem:[#allocation5 + $0x300] sm:$0xff]  ;;  %v271_v27 = vperm.slane %v1194_v34, 3  ;;  %v879_v34 = vld [vmem:[%s1372_s7 + $0x70] sm:$0xff] }
  0x9e   :  { %734 = vmatpush.msra.mxu0 %v551_v39  ;;  %v609_v39 = vld [vmem:[#allocation5 + $0x2c8] sm:$0xff]  ;;  %729 = vmatpush.msrb.mxu3 %v616_v40  ;;  %v648_v40 = vld [vmem:[%s1370_s5] sm:$0x3] }
  0x9f   :  { %689 = vmatpush.msrb.mxu1 %v552_v42  ;;  %774 = vmatpush.msra.mxu2 %v615_v30  ;;  %v647_v42 = vld [vmem:[#allocation5 + $0x3f8] sm:$0xff] }
  0xa0   :  { %735 = vmatpush.msra.mxu0 %v549_v41  ;;  %v607_v41 = vld [vmem:[#allocation5 + $0x2b8] sm:$0xff]  ;;  %794 = vmatpush.msra.mxu3 %v647_v42  ;;  %v894_v42 = vld [vmem:[%s1372_s7 + $0xe8] sm:$0xff] }
  0xa1   :  { %754 = vmatpush.msra.mxu1 %v583_v43  ;;  %775 = vmatpush.msra.mxu2 %v613_v33 }
  0xa2   :  { %736 = vmatpush.msra.mxu0 %v547_v44 }
  0xa3   :  { %755 = vmatpush.msra.mxu1 %v581_v45  ;;  %776 = vmatpush.msra.mxu2 %v611_v36  ;;  %v605_v45 = vld [vmem:[#allocation5 + $0x2a8] sm:$0xff] }
  0xa4   :  { %737 = vmatpush.msra.mxu0 %v545_v48  ;;  %v645_v48 = vld [vmem:[#allocation5 + $0x3e8] sm:$0xff] }
  0xa5   :  { %756 = vmatpush.msra.mxu1 %v579_v49  ;;  %777 = vmatpush.msra.mxu2 %v609_v39  ;;  %v895_v39 = vld [vmem:[%s1372_s7 + $0xf0] sm:$0xff] }
  0xa6   :  { %738 = vmatpush.msra.mxu0 %v543_v50  ;;  %v603_v50 = vld [vmem:[#allocation5 + $0x298] sm:$0xff]  ;;  %795 = vmatpush.msra.mxu3 %v645_v48 }
  0xa7   :  { %757 = vmatpush.msra.mxu1 %v577_v51  ;;  %778 = vmatpush.msra.mxu2 %v607_v41  ;;  %v643_v51 = vld [vmem:[#allocation5 + $0x3d8] sm:$0xff]  ;;  %v878_v41 = vld [vmem:[%s1372_s7 + $0x68] sm:$0xff] }
  0xa8   :  { %739 = vmatpush.msra.mxu0 %v541_v53  ;;  %796 = vmatpush.msra.mxu3 %v643_v51 }
  0xa9   :  { %758 = vmatpush.msra.mxu1 %v575_v57  ;;  %779 = vmatpush.msra.mxu2 %v605_v45  ;;  %v650_v45 = vperm.slane %v648_v40, 0 }
  0xaa   :  { %740 = vmatpush.msra.mxu0 %v539_v56  ;;  %797 = vmatpush.msra.mxu3 %v641_v59  ;;  %v873_v59 = vld [vmem:[%s1372_s7 + $0x40] sm:$0xff] }
  0xab   :  { %759 = vmatpush.msra.mxu1 %v573_v61  ;;  %780 = vmatpush.msra.mxu2 %v603_v50  ;;  %v892_v50 = vld [vmem:[%s1372_s7 + $0xd8] sm:$0xff] }
  0xac   :  { %741 = vmatpush.msra.mxu0 %v537_v60  ;;  %798 = vmatpush.msra.mxu3 %v639_v63  ;;  %v888_v63 = vld [vmem:[%s1372_s7 + $0xb8] sm:$0xff] }
  0xad   :  { %760 = vmatpush.msra.mxu1 %v571_v1  ;;  %781 = vmatpush.msra.mxu2 %v601_v58  ;;  %v890_v58 = vld [vmem:[%s1372_s7 + $0xc8] sm:$0xff] }
  0xae   :  { %742 = vmatpush.msra.mxu0 %v535_v0  ;;  %799 = vmatpush.msra.mxu3 %v637_v3 }
  0xaf   :  { %761 = vmatpush.msra.mxu1 %v569_v5  ;;  %782 = vmatpush.msra.mxu2 %v599_v62  ;;  %v872_v62 = vld [vmem:[%s1372_s7 + $0x38] sm:$0xff] }
  0xb0   :  { %743 = vmatpush.msra.mxu0 %v533_v4  ;;  %800 = vmatpush.msra.mxu3 %v635_v7 }
  0xb1   :  { %762 = vmatpush.msra.mxu1 %v567_v9  ;;  %783 = vmatpush.msra.mxu2 %v597_v2  ;;  %v593_v9 = vld [vmem:[#allocation5 + $0x248] sm:$0xff] }
  0xb2   :  { %744 = vmatpush.msra.mxu0 %v531_v8  ;;  %801 = vmatpush.msra.mxu3 %v633_v10  ;;  %v886_v10 = vld [vmem:[%s1372_s7 + $0xa8] sm:$0xff] }
  0xb3   :  { %763 = vmatpush.msra.mxu1 %v565_v13  ;;  %784 = vmatpush.msra.mxu2 %v595_v6  ;;  %v589_v13 = vld [vmem:[#allocation5 + $0x228] sm:$0xff]  ;;  %v887_v6 = vld [vmem:[%s1372_s7 + $0xb0] sm:$0xff] }
  0xb4   :  { %745 = vmatpush.msra.mxu0 %v529_v12  ;;  %v631_v12 = vld [vmem:[#allocation5 + $0x378] sm:$0xff] }
  0xb5   :  { %764 = vmatpush.msra.mxu1 %v563_v16  ;;  %785 = vmatpush.msra.mxu2 %v593_v9  ;;  %v585_v16 = vld [vmem:[#allocation5 + $0x208] sm:$0xff] }
  0xb6   :  { %746 = vmatpush.msra.mxu0 %v527_v15  ;;  %802 = vmatpush.msra.mxu3 %v631_v12  ;;  %v627_v15 = vld [vmem:[#allocation5 + $0x358] sm:$0xff]  ;;  %v870_v9 = vld [vmem:[%s1372_s7 + $0x28] sm:$0xff] }
  0xb7   :  { %765 = vmatpush.msra.mxu1 %v561_v46  ;;  %786 = vmatpush.msra.mxu2 %v591_v11  ;;  %v619_v46 = vld [vmem:[#allocation5 + $0x318] sm:$0xff] }
  0xb8   :  { %747 = vmatpush.msra.mxu0 %v525_v18  ;;  %803 = vmatpush.msra.mxu3 %v629_v52  ;;  %v621_v18 = vld [vmem:[#allocation5 + $0x328] sm:$0xff]  ;;  %v869_v52 = vld [vmem:[%s1372_s7 + $0x20] sm:$0xff] }
  0xb9   :  { %766 = vmatpush.msra.mxu1 %v559_v22  ;;  %787 = vmatpush.msra.mxu2 %v589_v13 }
  0xba   :  { %748 = vmatpush.msra.mxu0 %v523_v21  ;;  %804 = vmatpush.msra.mxu3 %v627_v15 }
  0xbb   :  { %767 = vmatpush.msra.mxu1 %v557_v26  ;;  %788 = vmatpush.msra.mxu2 %v587_v14 }
  0xbc   :  { %749 = vmatpush.msra.mxu0 %v521_v25  ;;  %805 = vmatpush.msra.mxu3 %v625_v17 }
  0xbd   :  { %768 = vmatpush.msra.mxu1 %v555_v29  ;;  %789 = vmatpush.msra.mxu2 %v585_v16  ;;  %v820_v16 = vld [vmem:[%s1366_s1] sm:$0x3] }
  0xbe   :  { %806 = vmatpush.msra.mxu3 %v623_v47 }
  0xbf   :  { %769 = vmatpush.msra.mxu1 %v553_v32 }
  0xc0   :  { %v293_v43 = vpop.f32.mrf.mxu0  ;;  %807 = vmatpush.msra.mxu3 %v621_v18  ;;  %v815_v18 = vld [vmem:[%s1371_s6 + $0x8] sm:$0xff] }
  0xc1   :  { %v294_v44 = vadd.f32 %v293_v43, %v268_v38  ;;  %v896_v38 = vld [vmem:[%s1372_s7 + $0xf8] sm:$0xff]  ;;  %v877_v43 = vld [vmem:[%s1372_s7 + $0x60] sm:$0xff] }
  0xc2   :  { %808 = vmatpush.msra.mxu3 %v619_v46 }
  0xc4   :  { %809 = vmatpush.msra.mxu3 %v617_v19 }
  0xc6   :  { %v313_v49 = vpop.f32.mrf.mxu1 }
  0xc7   :  { %v314_v53 = vadd.f32 %v313_v49, %v294_v44  ;;  %v893_v44 = vld [vmem:[%s1372_s7 + $0xe0] sm:$0xff]  ;;  %v876_v49 = vld [vmem:[%s1372_s7 + $0x58] sm:$0xff] }
  0xc8   :  { %v353_v57 = vpop.f32.mrf.mxu3 }
  0xc9   :  { %v354_v60 = vadd.f32 %v353_v57, %v269_v54  ;;  %v891_v54 = vld [vmem:[%s1372_s7 + $0xd0] sm:$0xff]  ;;  %v874_v57 = vld [vmem:[%s1372_s7 + $0x48] sm:$0xff] }
  0xd7   :  { %v333_v55 = vpop.f32.mrf.mxu2 }
  0xd8   :  { %v334_v56 = vadd.f32 %v333_v55, %v314_v53  ;;  %v875_v53 = vld [vmem:[%s1372_s7 + $0x50] sm:$0xff] }
  0xd9   :  { %v373_v0 = vpop.f32.mrf.mxu0 }
  0xda   :  { %v516_v61 = vmax.f32 %v334_v56, 0.0  ;;  %v374_v1 = vadd.f32 %v373_v0, %v354_v60  ;;  %v889_v60 = vld [vmem:[%s1372_s7 + $0xc0] sm:$0xff]  ;;  %v651_v0 = vperm.slane %v648_v40, 1  ;;  %v947_v40 = vld [vmem:[%s1374_s9 + $0x28] sm:$0xff] }
  0xdc   :  { %670 = vmatmul.f32.vlgmr.msrb.gmra.mxu0 %v516_v61  ;;  %v393_v4 = vpop.f32.mrf.mxu1 }
  0xdd   :  { %v394_v5 = vadd.f32 %v393_v4, %v374_v1  ;;  %v814_v4 = vld [vmem:[%s1371_s6] sm:$0xff] }
  0xdf   :  { %v517_v8 = vmax.f32 %v394_v5, 0.0  ;;  %v871_v5 = vld [vmem:[%s1372_s7 + $0x30] sm:$0xff] }
  0xe1   :  { %690 = vmatmul.f32.vlgmr.msrb.gmra.mxu1 %v517_v8 }
  0xe4   :  { %750 = vmatmul.f32.vlgmr.msra.gmra.mxu0 %v516_v61 }
  0xe9   :  { %770 = vmatmul.f32.vlgmr.msra.gmra.mxu1 %v517_v8 }
  0xec   :  { %v413_v21 = vpop.f32.mrf.mxu2 }
  0xed   :  { %v414_v22 = vadd.f32 %v413_v21, %v270_v20  ;;  %v868_v21 = vld [vmem:[%s1372_s7 + $0x18] sm:$0xff] }
  0xf0   :  { %v433_v23 = vpop.f32.mrf.mxu3 }
  0xf1   :  { %v434_v24 = vadd.f32 %v433_v23, %v414_v22  ;;  %v867_v22 = vld [vmem:[%s1372_s7 + $0x10] sm:$0xff]  ;;  %v866_v23 = vld [vmem:[%s1372_s7 + $0x8] sm:$0xff] }
  0xf9   :  { %v453_v25 = vpop.f32.mrf.mxu0 }
  0xfa   :  { %v454_v26 = vadd.f32 %v453_v25, %v434_v24  ;;  %v885_v24 = vld [vmem:[%s1372_s7 + $0xa0] sm:$0xff] }
  0xfb   :  { %v865_v25 = vld [vmem:[%s1372_s7] sm:$0xff] }
  0xfc   :  { %v518_v28 = vmax.f32 %v454_v26, 0.0  ;;  %v513_v33 = vpop.f32.mrf.mxu3  ;;  %v884_v26 = vld [vmem:[%s1372_s7 + $0x98] sm:$0xff] }
  0xfd   :  { %v473_v29 = vpop.f32.mrf.mxu1 }
  0xfe   :  { %v474_v30 = vadd.f32 %v473_v29, %v271_v27  ;;  %710 = vmatmul.f32.vlgmr.msrb.gmra.mxu2 %v518_v28  ;;  %v883_v27 = vld [vmem:[%s1372_s7 + $0x90] sm:$0xff]  ;;  %v881_v29 = vld [vmem:[%s1372_s7 + $0x80] sm:$0xff] }
  0xff   :  { %901 = vmatpush.msrb.mxu2 %v880_v37  ;;  %v951_v37 = vld [vmem:[%s1374_s9 + $0x48] sm:$0xff] }
 0x100   :  { %v493_v31 = vpop.f32.mrf.mxu2 }
 0x101   :  { %v494_v32 = vadd.f32 %v493_v31, %v474_v30  ;;  %902 = vmatpush.msrb.mxu2 %v879_v34  ;;  %v957_v30 = vld [vmem:[%s1374_s9 + $0x78] sm:$0xff]  ;;  %v956_v31 = vld [vmem:[%s1374_s9 + $0x70] sm:$0xff]  ;;  %v950_v34 = vld [vmem:[%s1374_s9 + $0x40] sm:$0xff] }
 0x102   :  { %962 = vmatpush.msrb.mxu0 %v957_v30 }
 0x103   :  { %v514_v35 = vadd.f32 %v513_v33, %v494_v32  ;;  %903 = vmatpush.msrb.mxu2 %v878_v41  ;;  %v955_v32 = vld [vmem:[%s1374_s9 + $0x68] sm:$0xff]  ;;  %v954_v33 = vld [vmem:[%s1374_s9 + $0x60] sm:$0xff] }
 0x104   :  { %963 = vmatpush.msrb.mxu0 %v956_v31  ;;  %v946_v41 = vld [vmem:[%s1374_s9 + $0x20] sm:$0xff] }
 0x105   :  { %v519_v36 = vmax.f32 %v514_v35, 0.0  ;;  %904 = vmatpush.msrb.mxu2 %v877_v43  ;;  %v953_v35 = vld [vmem:[%s1374_s9 + $0x58] sm:$0xff] }
 0x106   :  { %790 = vmatmul.f32.vlgmr.msra.gmra.mxu2 %v518_v28  ;;  %v882_v28 = vld [vmem:[%s1372_s7 + $0x88] sm:$0xff]  ;;  %964 = vmatpush.msrb.mxu0 %v955_v32 }
 0x107   :  { %730 = vmatmul.f32.vlgmr.msrb.gmra.mxu3 %v519_v36  ;;  %905 = vmatpush.msrb.mxu2 %v876_v49  ;;  %v942_v49 = vld [vmem:[%s1374_s9] sm:$0xff] }
 0x108   :  { %921 = vmatpush.msrb.mxu3 %v896_v38  ;;  %965 = vmatpush.msrb.mxu0 %v954_v33  ;;  %v949_v38 = vld [vmem:[%s1374_s9 + $0x38] sm:$0xff] }
 0x109   :  { %906 = vmatpush.msrb.mxu2 %v875_v53 }
 0x10a   :  { %922 = vmatpush.msrb.mxu3 %v895_v39  ;;  %966 = vmatpush.msrb.mxu0 %v953_v35  ;;  %v948_v39 = vld [vmem:[%s1374_s9 + $0x30] sm:$0xff] }
 0x10b   :  { %907 = vmatpush.msrb.mxu2 %v874_v57  ;;  %v1012_v57 = vld [vmem:[%s1375_s10] ss:$0 sm:$0xff] }
 0x10c   :  { %923 = vmatpush.msrb.mxu3 %v894_v42 }
 0x10d   :  { %908 = vmatpush.msrb.mxu2 %v873_v59 }
 0x10e   :  { %924 = vmatpush.msrb.mxu3 %v893_v44  ;;  %v945_v44 = vld [vmem:[%s1374_s9 + $0x18] sm:$0xff] }
 0x10f   :  { %810 = vmatmul.f32.vlgmr.msra.gmra.mxu3 %v519_v36  ;;  %909 = vmatpush.msrb.mxu2 %v872_v62  ;;  %v952_v36 = vld [vmem:[%s1374_s9 + $0x50] sm:$0xff] }
 0x110   :  { %925 = vmatpush.msrb.mxu3 %v892_v50  ;;  %967 = vmatpush.msrb.mxu0 %v952_v36  ;;  %v1011_v50 = vld [vmem:[%s1373_s8] ss:$0 sm:$0xff] }
 0x111   :  { %910 = vmatpush.msrb.mxu2 %v871_v5 }
 0x112   :  { %926 = vmatpush.msrb.mxu3 %v891_v54  ;;  %968 = vmatpush.msrb.mxu0 %v951_v37 }
 0x113   :  { %911 = vmatpush.msrb.mxu2 %v870_v9 }
 0x114   :  { %927 = vmatpush.msrb.mxu3 %v890_v58  ;;  %969 = vmatpush.msrb.mxu0 %v950_v34 }
 0x115   :  { %912 = vmatpush.msrb.mxu2 %v869_v52 }
 0x116   :  { %928 = vmatpush.msrb.mxu3 %v889_v60  ;;  %970 = vmatpush.msrb.mxu0 %v949_v38 }
 0x117   :  { %913 = vmatpush.msrb.mxu2 %v868_v21 }
 0x118   :  { %929 = vmatpush.msrb.mxu3 %v888_v63  ;;  %971 = vmatpush.msrb.mxu0 %v948_v39 }
 0x119   :  { %914 = vmatpush.msrb.mxu2 %v867_v22 }
 0x11a   :  { %930 = vmatpush.msrb.mxu3 %v887_v6  ;;  %972 = vmatpush.msrb.mxu0 %v947_v40 }
 0x11b   :  { %915 = vmatpush.msrb.mxu2 %v866_v23 }
 0x11c   :  { %931 = vmatpush.msrb.mxu3 %v886_v10  ;;  %973 = vmatpush.msrb.mxu0 %v946_v41 }
 0x11d   :  { %916 = vmatpush.msrb.mxu2 %v865_v25 }
 0x11e   :  { %932 = vmatpush.msrb.mxu3 %v885_v24  ;;  %974 = vmatpush.msrb.mxu0 %v945_v44 }
 0x120   :  { %933 = vmatpush.msrb.mxu3 %v884_v26 }
 0x122   :  { %934 = vmatpush.msrb.mxu3 %v883_v27 }
 0x124   :  { %935 = vmatpush.msrb.mxu3 %v882_v28 }
 0x126   :  { %936 = vmatpush.msrb.mxu3 %v881_v29 }
 0x159   :  { %v671_v48 = vpop.f32.mrf.mxu0 }
 0x15a   :  { %v672_v55 = vadd.f32 %v671_v48, %v650_v45  ;;  %v944_v45 = vld [vmem:[%s1374_s9 + $0x10] sm:$0xff]  ;;  %v943_v48 = vld [vmem:[%s1374_s9 + $0x8] sm:$0xff] }
 0x15b   :  { %975 = vmatpush.msrb.mxu0 %v944_v45 }
 0x15d   :  { %976 = vmatpush.msrb.mxu0 %v943_v48 }
 0x15e   :  { %v691_v51 = vpop.f32.mrf.mxu1 }
 0x15f   :  { %v692_v61 = vadd.f32 %v691_v51, %v672_v55  ;;  %977 = vmatpush.msrb.mxu0 %v942_v49 }
 0x161   :  { %v751_v2 = vpop.f32.mrf.mxu0 }
 0x162   :  { %v752_v11 = vadd.f32 %v751_v2, %v651_v0 }
 0x166   :  { %v771_v8 = vpop.f32.mrf.mxu1 }
 0x167   :  { %v772_v14 = vadd.f32 %v771_v8, %v752_v11 }
 0x181   :  { %v711_v56 = vpop.f32.mrf.mxu2 }
 0x182   :  { %v712_v1 = vadd.f32 %v711_v56, %v692_v61 }
 0x189   :  { %v791_v13 = vpop.f32.mrf.mxu2 }
 0x18a   :  { %v731_v3 = vpop.f32.mrf.mxu3  ;;  %v792_v17 = vadd.f32 %v791_v13, %v772_v14 }
 0x18b   :  { %v732_v7 = vadd.f32 %v731_v3, %v712_v1 }
 0x18d   :  { %v816_v12 = vmul.f32 %v814_v4, %v732_v7 }
 0x18f   :  { %v818_v15 = vmax.f32 %v816_v12, 0.0 }
 0x191   :  { %840 = vmatpush.msrb.mxu1 %v818_v15 }
 0x192   :  { %v811_v47 = vpop.f32.mrf.mxu3  ;;  %1002 = vmatmul.msk.f32.vlgmr.msrb.gmra.mxu1 %vm821_vm0, %v820_v16 }
 0x193   :  { %v812_v46 = vadd.f32 %v811_v47, %v792_v17 }
 0x195   :  { %v817_v19 = vmul.f32 %v815_v18, %v812_v46 }
 0x197   :  { %v819_v20 = vmax.f32 %v817_v19, 0.0 }
 0x199   :  { %860 = vmatpush.msra.mxu1 %v819_v20 }
 0x19a   :  { %1003 = vmatmul.msk.f32.vlgmr.msra.gmra.mxu1 %vm821_vm0, %v820_v16 }
 0x20f   :  { %v842_v42 = vpop.f32.mrf.mxu1 }
 0x210   :  { %917 = vmatmul.f32.vlgmr.msrb.gmra.mxu2 %v842_v42 }
 0x217   :  { %v862_v43 = vpop.f32.mrf.mxu1 }
 0x218   :  { %937 = vmatmul.f32.vlgmr.msrb.gmra.mxu3 %v862_v43 }
 0x293   :  { %v918_v51 = vpop.f32.mrf.mxu2 }
 0x294   :  { %v919_v53 = vadd.f32 %v1011_v50, %v918_v51 }
 0x29b   :  { %v938_v54 = vpop.f32.mrf.mxu3 }
 0x29c   :  { %v939_v55 = vadd.f32 %v938_v54, %v919_v53 }
 0x29e   :  { %v941_v56 = vmax.f32 %v939_v55, 0.0 }
 0x2a0   :  { %978 = vmatmul.f32.vlgmr.msrb.gmra.mxu0 %v941_v56 }
 0x31d   :  { %v979_v58 = vpop.f32.mrf.mxu0 }
 0x31e   :  { %v980_v59 = vadd.f32 %v1012_v57, %v979_v58 }
 0x320   :  { %v982_v60 = vmax.f32 %v980_v59, 0.0 }
 0x322   :  { %983 = vst [vmem:[#allocation7] sm:$0x3] %v982_v60 }
 0x323   :  { %994 = dma.vmem_to_hbm [thread:$0]  %s990_s23, 32, %s992_s24, [#allocation4]  }
 0x324   :  { %1089 = dma.done.wait [#allocation4], 32  }
 0x325   :  { %1090 = vsyncadd [#allocation4], 4294967264 }
 0x326   :  { %999 = vsyncpa [#allocation3], 1 }
 0x327   :  { %1000 = vsyncpa [#allocation6], 1 }
 0x328   :  { %1001 = vsyncpa [#allocation4], 1 }

</bundles_post_ra>
